<compile_context>
chip_gen: v5e
topology: v5e:2x2
jax: 0.10.0
libtpu: 0.0.40
codegen_flags: <defaults>
</compile_context>

<pallas_src>
import jax
import jax.numpy as jnp
from jax.experimental import pallas as pl
from jax.experimental.pallas import tpu as pltpu


def _round_up(n, m):
    return ((n + m - 1) // m) * m


def _freq_linear_kernel(x_ref, w_ref, b_ref, o_ref):
    # x_ref: (tm, C), w_ref: (C, 2M), b_ref: (1, 2M), o_ref: (tm, 2M)
    h = jnp.dot(x_ref[...], w_ref[...], preferred_element_type=jnp.float32)
    o_ref[...] = h + b_ref[...]  # bias broadcasts over rows


def freq_linear_matmul(x, weights, bias, *, tm_max=2048):
    """h = x @ weights + bias, tiled over rows of x.

    - Grid iterates row tiles of size `tm` (multiple of 8, capped at tm_max),
      marked "parallel" so v7x can shard tiles across its 2 TensorCores
      (no-op on v5e/v6e).
    - Weights and bias use grid-invariant BlockSpecs (index_map -> (0, 0)).
    - T is padded up to a multiple of tm so the tail tile never goes OOB;
      the pad rows are sliced off afterwards.
    """
    T, C = x.shape
    C_w, M2 = weights.shape
    assert C == C_w, (C, C_w)

    # Row tile: multiple of 8, big enough to amortize per-step overhead,
    # small enough to leave lots of VMEM headroom for double-buffering
    # (tm=2048: ~0.5 MiB x-blocks + ~2 MiB padded out-blocks, << 32 MiB).
    tm = min(tm_max, _round_up(T, 8))
    tm = _round_up(tm, 8)

    n_tiles = pl.cdiv(T, tm)
    T_pad = n_tiles * tm
    if T_pad != T:
        x = jnp.pad(x, ((0, T_pad - T), (0, 0)))

    out = pl.pallas_call(
        _freq_linear_kernel,
        out_shape=jax.ShapeDtypeStruct((T_pad, M2), jnp.float32),
        grid=(n_tiles,),
        in_specs=[
            pl.BlockSpec((tm, C), lambda i: (i, 0)),     # row tile of x
            pl.BlockSpec((C, M2), lambda i: (0, 0)),     # resident weights
            pl.BlockSpec((1, M2), lambda i: (0, 0)),     # resident bias
        ],
        out_specs=pl.BlockSpec((tm, M2), lambda i: (i, 0)),
        compiler_params=pltpu.CompilerParams(
            dimension_semantics=("parallel",)),
    )(x, weights, bias)

    if T_pad != T:
        out = out[:T]
    return out


class FreqLinear:
    """JAX/Pallas port of the PyTorch FreqLinear module."""

    def __init__(self, in_channel, mode, bias=True, *, key=None):
        self.mode = mode
        scale = 1.0 / (in_channel + 4 * mode)
        if key is None:
            key = jax.random.PRNGKey(0)
        # scale * randn(in_channel, 2*mode)
        self.weights = (scale * jax.random.normal(
            key, (in_channel, 2 * mode), dtype=jnp.float32))
        # bias=False in torch adds the scalar 0; an all-zeros (1, 2M) array
        # is additively identical, so we keep one code path.
        self.bias = jnp.zeros((1, 2 * mode), dtype=jnp.float32)

    def __call__(self, x):
        B = x.shape[0]
        h = freq_linear_matmul(x, self.weights, self.bias)   # (B, 2*mode)
        h = h.reshape(B, self.mode, 2)
        # torch.view_as_complex: last dim (real, imag) -> complex64
        return jax.lax.complex(h[..., 0], h[..., 1])


def _reference(x, weights, bias, mode):
    h = jnp.einsum('tc,cm->tm', x, weights) + bias
    h = h.reshape(x.shape[0], mode, 2)
    return h[..., 0] + 1j * h[..., 1]


if __name__ == "__main__":
    key = jax.random.PRNGKey(0)
    k_x, k_w, k_x2 = jax.random.split(key, 3)

    # --- Small case matching the module's intended use ---------------------
    B = 8          # tokens / batch ("t" axis)
    in_channel = 32
    mode = 8       # -> (B, 2*mode) = (8, 16), complex result (B, mode)

    x = jax.random.normal(k_x, (B, in_channel), dtype=jnp.float32)

    layer = FreqLinear(in_channel, mode, bias=True, key=k_w)
    out = jax.block_until_ready(layer(x))

    ref = _reference(x, layer.weights, layer.bias, mode)
    assert out.shape == (B, mode), out.shape
    assert out.dtype == jnp.complex64, out.dtype
    assert jnp.allclose(out, ref, atol=1e-5, rtol=1e-5)

    # --- Exercise the tiled path (multi-step grid + ragged tail) -----------
    T2 = 200  # not a multiple of the forced tile size -> padded tail tile
    x2 = jax.random.normal(k_x2, (T2, in_channel), dtype=jnp.float32)
    h2 = jax.block_until_ready(
        freq_linear_matmul(x2, layer.weights, layer.bias, tm_max=16))
    ref2 = jnp.einsum('tc,cm->tm', x2, layer.weights) + layer.bias
    assert h2.shape == (T2, 2 * mode), h2.shape
    assert jnp.allclose(h2, ref2, atol=1e-5, rtol=1e-5)

    print("KERNEL_OK")
</pallas_src>

<mosaic_0001>
module attributes {stable_mosaic.version = 11 : i64} {
  func.func @_freq_linear_kernel(%arg0: i32, %arg1: memref<8x32xf32, #tpu.memory_space<vmem>>, %arg2: memref<32x16xf32, #tpu.memory_space<vmem>>, %arg3: memref<1x16xf32, #tpu.memory_space<vmem>>, %arg4: memref<8x16xf32, #tpu.memory_space<vmem>>) attributes {dimension_semantics = [#tpu.dimension_semantics<parallel>], iteration_bounds = array<i64: 1>, scalar_prefetch = 0 : i64, scratch_operands = 0 : i64, tpu.core_type = #tpu.core_type<tc>, window_params = [{transform_indices = @transform_0, window_bounds = array<i64: 8, 32>}, {pipeline_mode = #tpu.pipeline_mode<synchronous>, transform_indices = @transform_1, window_bounds = array<i64: 32, 16>}, {pipeline_mode = #tpu.pipeline_mode<synchronous>, transform_indices = @transform_2, window_bounds = array<i64: 1, 16>}, {transform_indices = @transform_3, window_bounds = array<i64: 8, 16>}]} {
    %c0 = arith.constant 0 : index
    %c0_0 = arith.constant 0 : index
    %0 = vector.load %arg1[%c0, %c0_0] : memref<8x32xf32, #tpu.memory_space<vmem>>, vector<8x32xf32>
    %c0_1 = arith.constant 0 : index
    %c0_2 = arith.constant 0 : index
    %1 = vector.load %arg2[%c0_1, %c0_2] : memref<32x16xf32, #tpu.memory_space<vmem>>, vector<32x16xf32>
    %cst = arith.constant dense<0.000000e+00> : vector<8x16xf32>
    %2 = tpu.matmul %0, %1, %cst {dimension_numbers = #tpu.dot_dimension_numbers<[1], [0], [0], [1], [0, 0, 1, 1], [], []>} : vector<8x32xf32>, vector<32x16xf32>, vector<8x16xf32> -> vector<8x16xf32>
    %c0_3 = arith.constant 0 : index
    %c0_4 = arith.constant 0 : index
    %3 = vector.load %arg3[%c0_3, %c0_4] : memref<1x16xf32, #tpu.memory_space<vmem>>, vector<1x16xf32>
    %4 = vector.broadcast %3 : vector<1x16xf32> to vector<8x16xf32>
    %5 = arith.addf %2, %4 : vector<8x16xf32>
    %c0_5 = arith.constant 0 : index
    %c0_6 = arith.constant 0 : index
    %6 = vector.load %arg4[%c0_5, %c0_6] : memref<8x16xf32, #tpu.memory_space<vmem>>, vector<8x16xf32>
    tpu.vector_store %arg4[%c0_5, %c0_6], %5 {strides = array<i32>} : memref<8x16xf32, #tpu.memory_space<vmem>>, vector<8x16xf32>,
    return
  }
  func.func @transform_0(%arg0: i32) -> (i32, i32) {
    %c0_i32 = arith.constant 0 : i32
    %c0_i32_0 = arith.constant 0 : i32
    return %arg0, %c0_i32 : i32, i32
  }
  func.func @transform_1(%arg0: i32) -> (i32, i32) {
    %c0_i32 = arith.constant 0 : i32
    %c0_i32_0 = arith.constant 0 : i32
    %c0_i32_1 = arith.constant 0 : i32
    return %c0_i32, %c0_i32_0 : i32, i32
  }
  func.func @transform_2(%arg0: i32) -> (i32, i32) {
    %c0_i32 = arith.constant 0 : i32
    %c0_i32_0 = arith.constant 0 : i32
    %c0_i32_1 = arith.constant 0 : i32
    return %c0_i32, %c0_i32_0 : i32, i32
  }
  func.func @transform_3(%arg0: i32) -> (i32, i32) {
    %c0_i32 = arith.constant 0 : i32
    %c0_i32_0 = arith.constant 0 : i32
    return %arg0, %c0_i32 : i32, i32
  }
}

</mosaic_0001>

<bundles_post_ra>
// kernel: tpu_custom_call.1
= control target key start
LH: loop header
LB: loop body
LE: loop exit
PB: predicated region body
PF: predicated region fallthrough
CT: control target
= control target key end

     0   :  { %s137_s0 = inlined_call_operand.vmem [shape: f32[8,32], index: 0, kind: input, shape index: {}]   ;;  %s138_s1 = inlined_call_operand.vmem [shape: f32[32,16], index: 1, kind: input, shape index: {}]   ;;  %s139_s2 = inlined_call_operand.vmem [shape: f32[1,16], index: 2, kind: input, shape index: {}]   ;;  %s140_s3 = inlined_call_operand.hbm [shape: f32[8,16], index: 3, kind: output, shape index: {}]  }
   0x1   :  { %v19_v0 = vld [vmem:[%s138_s1 + $0x18] sm:$0xff]  ;;  %v18_v1 = vld [vmem:[%s138_s1 + $0x10] sm:$0xff]  ;;  %v17_v2 = vld [vmem:[%s138_s1 + $0x8] sm:$0xff] }
   0x2   :  { %40 = vmatpush.msra.mxu0 %v19_v0 }
   0x3   :  { %8 = vsyncpa [#allocation3], 0  ;;  %v16_v3 = vld [vmem:[%s138_s1] sm:$0xff]  ;;  %vm24_vm0 = vcmask 261120   ;;  %s95_s24 = smov [#allocation2]   ;;  %s57_s28 = sshll.u32 %s140_s3, 4  ;;  %s58_s28 = int_to_ptr.hbm [resolvable:$true] %s57_s28 }
   0x4   :  { %41 = vmatpush.msra.mxu0 %v18_v1  ;;  %v15_v4 = vld [vmem:[%s137_s0] sm:$0xff]  ;;  %s55_s25 = sshll.u32 %s95_s24, 4  ;;  %vm48_vm1 = vcmask 130048   ;;  %s56_s25 = int_to_ptr.vmem [resolvable:$true] %s55_s25 }
   0x5   :  { %v68_v5 = vld [vmem:[%s139_s2] ss:$0 sm:$0xff] }
   0x6   :  { %42 = vmatpush.msra.mxu0 %v17_v2 }
   0x8   :  { %43 = vmatpush.msra.mxu0 %v16_v3 }
   0x9   :  { %66 = vmatmul.msk.f32.vlgmr.msra.gmra.mxu0 %vm24_vm0, %v15_v4 }
  0x86   :  { %v45_v6 = vpop.f32.mrf.mxu0 }
  0x87   :  { %v46_v7 = vadd.f32 %v68_v5, %v45_v6 }
  0x89   :  { %49 = vst.msk [vmem:[#allocation2] sm:$0xff] %vm48_vm1, %v46_v7 }
  0x8a   :  { %60 = dma.vmem_to_hbm [thread:$0]  %s56_s25, 128, %s58_s28, [#allocation3]  }
  0x8b   :  { %93 = dma.done.wait [#allocation3], 128  }
  0x8c   :  { %94 = vsyncadd [#allocation3], 4294967168 }
  0x8d   :  { %65 = vsyncpa [#allocation3], 1 }

</bundles_post_ra>
